<compile_context>
chip_gen: v7x
topology: tpu7x:2x2x1
jax: 0.10.0
libtpu: 0.0.40
codegen_flags: <defaults>
</compile_context>

<pallas_src>
import functools

import jax
import jax.numpy as jnp
import numpy as np
from jax import lax
from jax.experimental import pallas as pl
from jax.experimental.pallas import tpu as pltpu

H, W = 16, 16          # input spatial
CIN = 11               # conv1 input channels
C1 = 20                # conv1 / conv2 channels
C3 = 128               # conv3 output channels
PAD1 = 3               # conv1 padding
CINP = 16              # conv1 input channels padded to a multiple of 8
C1P = 24               # conv1/conv2 channels padded to a multiple of 8

HP = H + 2 * PAD1      # 22: padded rows (same grid for stage-1 and stage-2)
STRIDE = 24            # flattened-frame row stride (multiple of 8)
FRAME = 640            # per-image frame length in lanes (5 * 128 >= 22*24+50)
S1 = HP - 2            # 20: v2 / v5 spatial
S3 = S1 - 2            # 18: output spatial

_TAP_OFFSETS = tuple(kh * STRIDE + kw for kh in range(3) for kw in range(3))


@functools.lru_cache(maxsize=None)
def _roll_is_numpy_convention() -> bool:
    """Tiny one-time probe of pltpu.roll's sign convention on this backend."""
    def probe(x_ref, o_ref):
        o_ref[...] = pltpu.roll(x_ref[...], 1, axis=1)

    x = jnp.arange(8 * 128, dtype=jnp.float32).reshape(8, 128)
    y = pl.pallas_call(
        probe, out_shape=jax.ShapeDtypeStruct((8, 128), jnp.float32))(x)
    # jnp.roll(x, 1, axis=1)[0, 0] == x[0, 127] == 127
    return float(np.asarray(y)[0, 0]) == 127.0


def _shift(x, delta, length, numpy_roll):
    """result[..., p] = x[..., (p + delta) % length]  (static delta)."""
    d = delta % length
    if d == 0:
        return x
    shift = (length - d) if numpy_roll else d
    return pltpu.roll(x, shift, axis=1)


def _fused_kernel(x_ref, m_ref, w1_ref, b1_ref, w2_ref, w3_ref, b3_ref,
                  o_ref, *, block_b, numpy_roll):
    L = block_b * FRAME
    x = x_ref[0]            # (CINP, L) pre-padded stage-1 frames (host built)
    mask = m_ref[...]       # (1, L): 1.0 on the 20x20 valid window, else 0.0

    def conv3x3(src, w_ref):
        # 9 accumulating tap matmuls (no im2col concatenate):
        #   acc[:, p] = sum_k W_k^T @ src[:, p + kh*STRIDE + kw]
        acc = jnp.dot(w_ref[0], src, preferred_element_type=jnp.float32)
        for k in range(1, 9):
            tap = _shift(src, _TAP_OFFSETS[k], L, numpy_roll)
            acc = acc + jnp.dot(w_ref[k], tap,
                                preferred_element_type=jnp.float32)
        return acc

    # ---- stage 1: v2 = tanh(conv1(x) + b1) ------------------------------
    v2 = jnp.tanh(conv3x3(x, w1_ref) + b1_ref[...])           # (C1P, L)

    # ---- stage 2: v5 = tanh((v2 + v2) + conv2(v2)), pad=1, no bias -------
    # The zero-padded stage-2 frame is the masked v2 shifted one row and one
    # column (+STRIDE+1 lanes); every halo lane picks up a masked zero.
    v2pad = _shift(v2 * mask, -(STRIDE + 1), L, numpy_roll)
    v5 = jnp.tanh(2.0 * v2 + conv3x3(v2pad, w2_ref))           # (C1P, L)

    # ---- stage 3: out = conv3(v5) + b3 (valid) ---------------------------
    y = conv3x3(v5, w3_ref)                                    # (C3, L)

    # Single transpose to a lane-dense (..., 128) slab, slice the valid
    # 18x18 window out of each 22x24 frame, add bias, store.
    yt = jnp.transpose(y)                                      # (L, C3)
    yt = yt.reshape(block_b, FRAME, C3)[:, :HP * STRIDE, :]    # (B, 528, 128)
    yt = yt.reshape(block_b, HP, STRIDE, C3)[:, :S3, :S3, :]   # (B, 18,18,128)
    o_ref[...] = yt + b3_ref[...]


def _pick_block_b(n):
    """Fold several images into one grid step (single-TC v5e/v6e win) while
    keeping >= 2 grid steps when possible so v7x's two TensorCores stay busy."""
    best = 1
    for d in range(1, min(n, 8) + 1):
        if n % d == 0 and (n // d >= 2 or n == 1):
            best = d
    return best


def _prep_weights(params):
    (w1, b1), (w2, _), (w3, b3) = params     # OIHW weights, 1-D biases

    def taps(w, cout_pad, cin_pad):
        cout, cin = w.shape[0], w.shape[1]
        wt = jnp.transpose(w, (2, 3, 0, 1)).reshape(9, cout, cin)
        return jnp.pad(wt, ((0, 0), (0, cout_pad - cout), (0, cin_pad - cin)))

    w1t = taps(w1, C1P, CINP)                         # (9, 24, 16)
    w2t = taps(w2, C1P, C1P)                          # (9, 24, 24)
    w3t = taps(w3, C3, C1P)                           # (9, 128, 24)
    b1p = jnp.pad(b1, (0, C1P - C1)).reshape(C1P, 1)  # (24, 1)
    b3p = b3.reshape(1, C3)                           # (1, 128)
    return w1t, b1p, w2t, w3t, b3p


def _prep_input(x, block_b):
    """NCHW (N,11,16,16) -> (N/block_b, 16, block_b*640) pre-padded frames."""
    n = x.shape[0]
    xc = jnp.pad(x.astype(jnp.float32),
                 ((0, 0), (0, CINP - CIN), (0, 0), (0, 0)))
    xp = jnp.pad(xc, ((0, 0), (0, 0), (PAD1, PAD1),
                      (PAD1, STRIDE - W - PAD1)))               # (N,16,22,24)
    xf = jnp.pad(xp.reshape(n, CINP, HP * STRIDE),
                 ((0, 0), (0, 0), (0, FRAME - HP * STRIDE)))    # (N,16,640)
    nb = n // block_b
    xf = xf.reshape(nb, block_b, CINP, FRAME)
    xf = jnp.transpose(xf, (0, 2, 1, 3)).reshape(nb, CINP, block_b * FRAME)
    return xf


def _valid_mask(block_b):
    q = np.arange(FRAME)
    m = ((q // STRIDE < S1) & (q % STRIDE < S1)).astype(np.float32)
    return jnp.asarray(np.tile(m, block_b))[None, :]            # (1, B*640)


def model_tanh_forward(x, params, *, block_b=None):
    """x: NCHW (N, 11, 16, 16) float32 -> NCHW (N, 128, 18, 18) float32."""
    n = x.shape[0]
    if block_b is None:
        block_b = _pick_block_b(n)
    assert n % block_b == 0, (n, block_b)
    nb = n // block_b
    L = block_b * FRAME

    xf = _prep_input(x, block_b)
    mask = _valid_mask(block_b)
    w1t, b1p, w2t, w3t, b3p = _prep_weights(params)

    kernel = functools.partial(_fused_kernel, block_b=block_b,
                               numpy_roll=_roll_is_numpy_convention())

    out_nhwc = pl.pallas_call(
        kernel,
        out_shape=jax.ShapeDtypeStruct((n, S3, S3, C3), jnp.float32),
        grid=(nb,),
        in_specs=[
            pl.BlockSpec((1, CINP, L), lambda i: (i, 0, 0)),
            pl.BlockSpec((1, L), lambda i: (0, 0)),
            pl.BlockSpec((9, C1P, CINP), lambda i: (0, 0, 0)),
            pl.BlockSpec((C1P, 1), lambda i: (0, 0)),
            pl.BlockSpec((9, C1P, C1P), lambda i: (0, 0, 0)),
            pl.BlockSpec((9, C3, C1P), lambda i: (0, 0, 0)),
            pl.BlockSpec((1, C3), lambda i: (0, 0)),
        ],
        out_specs=pl.BlockSpec((block_b, S3, S3, C3),
                               lambda i: (i, 0, 0, 0)),
        compiler_params=pltpu.CompilerParams(
            dimension_semantics=("parallel",)),
    )(xf, mask, w1t, b1p, w2t, w3t, b3p)

    # Kernel stores a lane-dense NHWC slab; convert to PyTorch NCHW outside it.
    return jnp.transpose(out_nhwc, (0, 3, 1, 2))


def reference_forward(x, params):
    # TODO(synk): in-kernel matmuls use default MXU precision; reference uses
    # HIGHEST, hence the loose (5e-2) comparison tolerance below.
    (w1, b1), (w2, _), (w3, b3) = params
    dn = ("NCHW", "OIHW", "NCHW")
    hp = lax.Precision.HIGHEST
    v1 = lax.conv_general_dilated(x, w1, (1, 1), [(3, 3), (3, 3)],
                                  dimension_numbers=dn, precision=hp)
    v2 = jnp.tanh(v1 + b1[None, :, None, None])
    v4 = (v2 + v2) + lax.conv_general_dilated(
        v2, w2, (1, 1), [(1, 1), (1, 1)], dimension_numbers=dn, precision=hp)
    v5 = jnp.tanh(v4)
    out = lax.conv_general_dilated(v5, w3, (1, 1), "VALID",
                                   dimension_numbers=dn, precision=hp)
    return out + b3[None, :, None, None]


def init_conv(key, cin, cout, bias=True):
    kw_, kb_ = jax.random.split(key)
    fan_in = 3 * 3 * cin
    bound = 1.0 / (fan_in ** 0.5)
    w = jax.random.uniform(kw_, (cout, cin, 3, 3), jnp.float32, -bound, bound)
    b = (jax.random.uniform(kb_, (cout,), jnp.float32, -bound, bound)
         if bias else jnp.zeros((cout,), jnp.float32))
    return w, b


if __name__ == "__main__":
    key = jax.random.PRNGKey(0)
    kx, k1, k2, k3 = jax.random.split(key, 4)

    # small NCHW input like the PyTorch module: batch=2, 11 channels, 16x16
    x = jax.random.normal(kx, (2, CIN, H, W), jnp.float32)

    params = (
        init_conv(k1, CIN, C1, bias=True),    # conv : 11 -> 20, pad=3
        init_conv(k2, C1, C1, bias=False),    # conv2: 20 -> 20, pad=1, no bias
        init_conv(k3, C1, C3, bias=True),     # conv3: 20 -> 128, valid
    )

    out = jax.block_until_ready(model_tanh_forward(x, params))
    assert out.shape == (2, C3, S3, S3), out.shape

    ref = reference_forward(x, params)
    np.testing.assert_allclose(np.asarray(out), np.asarray(ref),
                               atol=5e-2, rtol=5e-2)
    print("KERNEL_OK")
</pallas_src>

<mosaic_0001>
module attributes {stable_mosaic.version = 11 : i64} {
  func.func @probe(%arg0: memref<8x128xf32, #tpu.memory_space<vmem>>, %arg1: memref<8x128xf32, #tpu.memory_space<vmem>>) attributes {dimension_semantics = [], scalar_prefetch = 0 : i64, scratch_operands = 0 : i64, tpu.core_type = #tpu.core_type<tc>} {
    %c0 = arith.constant 0 : index
    %c0_0 = arith.constant 0 : index
    %0 = vector.load %arg0[%c0, %c0_0] : memref<8x128xf32, #tpu.memory_space<vmem>>, vector<8x128xf32>
    %c1_i32 = arith.constant 1 : i32
    %1 = tpu.dynamic_rotate %0 by %c1_i32 dim 1 : vector<8x128xf32>, i32 -> vector<8x128xf32>
    %c0_1 = arith.constant 0 : index
    %c0_2 = arith.constant 0 : index
    %2 = vector.load %arg1[%c0_1, %c0_2] : memref<8x128xf32, #tpu.memory_space<vmem>>, vector<8x128xf32>
    tpu.vector_store %arg1[%c0_1, %c0_2], %1 {strides = array<i32>} : memref<8x128xf32, #tpu.memory_space<vmem>>, vector<8x128xf32>,
    return
  }
}

</mosaic_0001>

<bundles_post_ra>
// kernel: tpu_custom_call.1
= control target key start
LH: loop header
LB: loop body
LE: loop exit
PB: predicated region body
PF: predicated region fallthrough
CT: control target
= control target key end

     0   :  { %6 = vsyncpa [#allocation3], 0  ;;  %s128_s0 = inlined_call_operand.hbm [shape: f32[8,128], index: 0, kind: input, shape index: {}]   ;;  %s129_s1 = inlined_call_operand.hbm [shape: f32[8,128], index: 1, kind: output, shape index: {}]  }
   0x1   :  { %7 = vsyncpa [#allocation4], 0  ;;  %s91_s6 = smov [#allocation2]   ;;  %s43_s10 = scalar_lea.hbm %s128_s0, 128 }
   0x2   :  { %s14_s7 = sshll.u32 %s91_s6, 4  ;;  %p44_p0 = scmp.ne.s32.totalorder %s128_s0, %s43_s10  ;;  %s15_s7 = int_to_ptr.vmem [resolvable:$true] %s14_s7 }
   0x3   :  { %p47_p1 = scmp.lt.u32.totalorder %s43_s10, %s128_s0 }
   0x5   :  { %p49_p2 = pnand %p47_p1, %p44_p0 }
   0x7   :  { %52 = shalt.err (!%p49_p2)
}
   0x8   :  { %s53_s15 = scalar_lea.vmem %s15_s7, 128  ;;  %p58_p4 = scmp.lt.s32.totalorder %s15_s7, %s15_s7 }
   0x9   :  { %p54_p3 = scmp.ne.s32.totalorder %s15_s7, %s53_s15  ;;  %p59_p5 = scmp.lt.s32.totalorder %s53_s15, %s53_s15 }
   0xb   :  { %p60_p6 = por %p59_p5, %p58_p4 }
   0xd   :  { %p61_p7 = pnand %p60_p6, %p54_p3 }
   0xf   :  { %64 = shalt.err (!%p61_p7)
}
  0x10   :  { %17 = dma.hbm_to_vmem [thread:$0]  %s128_s0, 128, %s15_s7, [#allocation3]  }
  0x11   :  { %87 = dma.done.wait [#allocation3], 128  }
  0x12   :  { %88 = vsyncadd [#allocation3], 4294967168  ;;  %v21_v0 = vld [vmem:[#allocation2] sm:$0xff]  ;;  %s92_s18 = smov 1   ;;  %s93_s19 = smov [#allocation5]  }
  0x13   :  { %22 = vrot.lane.b32.xlu0 %v21_v0, %s92_s18  ;;  %s31_s20 = sshll.u32 %s93_s19, 4  ;;  %s32_s20 = int_to_ptr.vmem [resolvable:$true] %s31_s20 }
  0x14   :  { %s65_s21 = scalar_lea.vmem %s32_s20, 128  ;;  %p70_p9 = scmp.lt.s32.totalorder %s32_s20, %s32_s20 }
  0x15   :  { %p66_p8 = scmp.ne.s32.totalorder %s32_s20, %s65_s21  ;;  %p71_p10 = scmp.lt.s32.totalorder %s65_s21, %s65_s21 }
  0x17   :  { %p72_p11 = por %p71_p10, %p70_p9 }
  0x19   :  { %p73_p12 = pnand %p72_p11, %p66_p8 }
  0x85   :  { %v23_v1 = vpop.permute.xlu0 %22 }
  0x86   :  { %24 = vst [vmem:[#allocation5] sm:$0xff] %v23_v1 }
  0x87   :  { %76 = shalt.err (!%p73_p12)
}
  0x88   :  { %s77_s0 = scalar_lea.hbm %s129_s1, 128 }
  0x89   :  { %p78_p13 = scmp.ne.s32.totalorder %s129_s1, %s77_s0  ;;  %p81_p0 = scmp.lt.u32.totalorder %s77_s0, %s129_s1 }
  0x8b   :  { %p83_p1 = pnand %p81_p0, %p78_p13 }
  0x8d   :  { %86 = shalt.err (!%p83_p1)
}
  0x8e   :  { %34 = dma.vmem_to_hbm [thread:$0]  %s32_s20, 128, %s129_s1, [#allocation4]  }
  0x8f   :  { %89 = dma.done.wait [#allocation4], 128  }
  0x90   :  { %90 = vsyncadd [#allocation4], 4294967168 }
  0x91   :  { %38 = vsyncpa [#allocation3], 1 }
  0x92   :  { %39 = vsyncpa [#allocation4], 1 }

</bundles_post_ra>
